<compile_context>
chip_gen: v7x
topology: tpu7x:2x2x1
jax: 0.10.0
libtpu: 0.0.40
codegen_flags: <defaults>
</compile_context>

<pallas_src>
import jax
import jax.numpy as jnp
from jax.experimental import pallas as pl
from jax.experimental.pallas import tpu as pltpu


# ---------------------------------------------------------------------------
# Kernel
# ---------------------------------------------------------------------------
def _make_kernel(epi_dtype):
    """epi_dtype: dtype for the bias-add + ReLU epilogues (bf16 on v6e/v7x)."""

    def kernel(xT_ref, w1_ref, w2_ref, b2_ref, w3_ref, b3_ref,
               w4_ref, b4_ref, oT_ref):
        # fc1 (+ folded b1) + relu : (128,8) @ (8,tile) -> (128,tile), f32 acc
        h = jnp.dot(w1_ref[...], xT_ref[...], preferred_element_type=jnp.float32)
        h = jnp.maximum(h.astype(epi_dtype), 0).astype(jnp.bfloat16)

        # fc2 + relu : (128,128) @ (128,tile)
        h = jnp.dot(w2_ref[...], h, preferred_element_type=jnp.float32)
        h = jnp.maximum(h.astype(epi_dtype) + b2_ref[...], 0).astype(jnp.bfloat16)

        # fc3 + relu : (64,128) @ (128,tile)
        h = jnp.dot(w3_ref[...], h, preferred_element_type=jnp.float32)
        h = jnp.maximum(h.astype(epi_dtype) + b3_ref[...], 0).astype(jnp.bfloat16)

        # fc4 : (2,64) @ (64,tile) -> (2,tile); output stays lane-dense on batch
        out = jnp.dot(w4_ref[...], h, preferred_element_type=jnp.float32) + b4_ref[...]
        oT_ref[...] = out.astype(oT_ref.dtype)

    return kernel


# ---------------------------------------------------------------------------
# Helpers
# ---------------------------------------------------------------------------
def _cdiv(a, b):
    return (a + b - 1) // b


def _default_epilogue_dtype():
    # v5e has no bf16 VALU: keep the bias+ReLU epilogue in f32 there.
    try:
        kind = jax.devices()[0].device_kind.lower()
    except Exception:
        kind = ""
    return jnp.float32 if "v5" in kind else jnp.bfloat16


def _choose_tiling(B, batch_tile):
    """Pick (tile, n_tiles, B_pad): tile multiple of 128, >=2 tiles when B>=256."""
    blocks = _cdiv(max(B, 1), 128)           # number of 128-wide lane blocks
    tgt_blocks = max(1, batch_tile // 128)
    n_tiles = _cdiv(blocks, tgt_blocks)
    if blocks >= 2:
        n_tiles = max(n_tiles, 2)            # keep both v7x TensorCores busy
    tile_blocks = _cdiv(blocks, n_tiles)
    tile = tile_blocks * 128
    n_tiles = _cdiv(blocks, tile_blocks)     # drop empty tail tiles
    B_pad = tile * n_tiles
    return tile, n_tiles, B_pad


def prepare_params(params, epi_dtype=None):
    """One-time cast/reshape/fuse of torch-layout params; reuse across calls."""
    if epi_dtype is None:
        epi_dtype = _default_epilogue_dtype()
    w1 = jnp.concatenate(
        [params["w1"].astype(jnp.float32),
         params["b1"].reshape(-1, 1).astype(jnp.float32)], axis=1
    ).astype(jnp.bfloat16)                                  # (128, 8): b1 folded
    return {
        "w1": w1,
        "w2": params["w2"].astype(jnp.bfloat16),            # (128, 128)
        "b2": params["b2"].reshape(-1, 1).astype(epi_dtype),
        "w3": params["w3"].astype(jnp.bfloat16),            # (64, 128)
        "b3": params["b3"].reshape(-1, 1).astype(epi_dtype),
        "w4": params["w4"].astype(jnp.bfloat16),             # (2, 64)
        "b4": params["b4"].reshape(-1, 1).astype(jnp.float32),
        "epi_dtype": epi_dtype,
    }


# ---------------------------------------------------------------------------
# Wrapper
# ---------------------------------------------------------------------------
def mlp_forward(x, params, *, batch_tile=2048):
    """x: (B, 7) float32. params: torch-layout dict or prepare_params() output."""
    if "b1" in params:                       # raw torch-layout params
        params = prepare_params(params)
    epi_dtype = params["epi_dtype"]

    B, D_in = x.shape
    assert D_in == 7
    D_out = params["w4"].shape[0]

    tile, n_tiles, B_pad = _choose_tiling(B, batch_tile)

    # Lane-dense transposed input with a ones row for the folded b1: (8, B_pad).
    # TODO(synk): callers that can produce x already as (8, B) bf16 skip this pass.
    xT = jnp.concatenate(
        [x.T.astype(jnp.bfloat16), jnp.ones((1, B), dtype=jnp.bfloat16)], axis=0)
    xT = jnp.pad(xT, ((0, 0), (0, B_pad - B)))

    def full_spec(arr):
        return pl.BlockSpec(arr.shape, lambda i: (0, 0))

    # Rough per-step live-set estimate (f32+bf16 (128,tile) intermediates plus
    # double-buffered I/O blocks), with 2x headroom; keeps v5e's 16 MiB default
    # from being exceeded silently when batch_tile is raised.
    vmem_bytes = 6 * 128 * tile + 2 * (8 * tile * 2 + D_out * tile * 4)
    vmem_limit = int(min(100 << 20, max(16 << 20, 2 * vmem_bytes + (4 << 20))))

    outT = pl.pallas_call(
        _make_kernel(epi_dtype),
        out_shape=jax.ShapeDtypeStruct((D_out, B_pad), jnp.float32),
        grid_spec=pltpu.PrefetchScalarGridSpec(
            num_scalar_prefetch=0,
            grid=(n_tiles,),
            in_specs=[
                pl.BlockSpec((8, tile), lambda i: (0, i)),   # [x.T; 1]
                full_spec(params["w1"]),
                full_spec(params["w2"]), full_spec(params["b2"]),
                full_spec(params["w3"]), full_spec(params["b3"]),
                full_spec(params["w4"]), full_spec(params["b4"]),
            ],
            out_specs=pl.BlockSpec((D_out, tile), lambda i: (0, i)),  # out.T
        ),
        compiler_params=pltpu.CompilerParams(
            dimension_semantics=("parallel",),
            vmem_limit_bytes=vmem_limit),
    )(xT, params["w1"], params["w2"], params["b2"],
      params["w3"], params["b3"], params["w4"], params["b4"])

    return outT[:, :B].T  # (B, 2) float32


# ---------------------------------------------------------------------------
# Reference / init (test-only)
# ---------------------------------------------------------------------------
def init_params(key):
    """Mimic torch.nn.Linear default init (uniform +-1/sqrt(fan_in)), torch layout."""
    sizes = [(7, 128), (128, 128), (128, 64), (64, 2)]
    params = {}
    keys = jax.random.split(key, 2 * len(sizes))
    for idx, (fan_in, fan_out) in enumerate(sizes):
        bound = 1.0 / (float(fan_in) ** 0.5)
        params[f"w{idx + 1}"] = jax.random.uniform(
            keys[2 * idx], (fan_out, fan_in), minval=-bound, maxval=bound,
            dtype=jnp.float32)
        params[f"b{idx + 1}"] = jax.random.uniform(
            keys[2 * idx + 1], (fan_out,), minval=-bound, maxval=bound,
            dtype=jnp.float32)
    return params


def reference_forward(x, params, compute_dtype=jnp.float32):
    h = x
    for i in range(1, 5):
        w, b = params[f"w{i}"], params[f"b{i}"]
        h = jnp.dot(h.astype(compute_dtype), w.T.astype(compute_dtype),
                    preferred_element_type=jnp.float32) + b
        if i < 4:
            h = jnp.maximum(h, 0.0)
    return h


if __name__ == "__main__":
    key = jax.random.PRNGKey(0)
    k_x, k_x2, k_p = jax.random.split(key, 3)

    params = init_params(k_p)
    prepared = prepare_params(params)

    # Small-batch correctness check.
    B = 8
    x = jax.random.normal(k_x, (B, 7), dtype=jnp.float32)
    out = mlp_forward(x, prepared)
    jax.block_until_ready(out)
    ref = reference_forward(x, params, compute_dtype=jnp.bfloat16)
    assert out.shape == (B, 2), out.shape
    assert jnp.allclose(out, ref, atol=3e-2, rtol=3e-2), "mismatch vs reference (B=8)"

    # Multi-tile / partial-padding check (exercises grid >= 2 and tail padding).
    B2 = 1000
    x2 = jax.random.normal(k_x2, (B2, 7), dtype=jnp.float32)
    out2 = mlp_forward(x2, prepared)
    jax.block_until_ready(out2)
    ref2 = reference_forward(x2, params, compute_dtype=jnp.bfloat16)
    assert out2.shape == (B2, 2), out2.shape
    assert jnp.allclose(out2, ref2, atol=3e-2, rtol=3e-2), "mismatch vs reference (B=1000)"

    print("KERNEL_OK")
</pallas_src>

<mosaic_0001>
module attributes {stable_mosaic.version = 11 : i64} {
  func.func @kernel(%arg0: i32, %arg1: memref<8x128xbf16, #tpu.memory_space<vmem>>, %arg2: memref<128x8xbf16, #tpu.memory_space<vmem>>, %arg3: memref<128x128xbf16, #tpu.memory_space<vmem>>, %arg4: memref<128x1xbf16, #tpu.memory_space<vmem>>, %arg5: memref<64x128xbf16, #tpu.memory_space<vmem>>, %arg6: memref<64x1xbf16, #tpu.memory_space<vmem>>, %arg7: memref<2x64xbf16, #tpu.memory_space<vmem>>, %arg8: memref<2x1xf32, #tpu.memory_space<vmem>>, %arg9: memref<2x128xf32, #tpu.memory_space<vmem>>) attributes {dimension_semantics = [#tpu.dimension_semantics<parallel>], iteration_bounds = array<i64: 1>, scalar_prefetch = 0 : i64, scratch_operands = 0 : i64, tpu.core_type = #tpu.core_type<tc>, window_params = [{transform_indices = @transform_0, window_bounds = array<i64: 8, 128>}, {pipeline_mode = #tpu.pipeline_mode<synchronous>, transform_indices = @transform_1, window_bounds = array<i64: 128, 8>}, {pipeline_mode = #tpu.pipeline_mode<synchronous>, transform_indices = @transform_2, window_bounds = array<i64: 128, 128>}, {pipeline_mode = #tpu.pipeline_mode<synchronous>, transform_indices = @transform_3, window_bounds = array<i64: 128, 1>}, {pipeline_mode = #tpu.pipeline_mode<synchronous>, transform_indices = @transform_4, window_bounds = array<i64: 64, 128>}, {pipeline_mode = #tpu.pipeline_mode<synchronous>, transform_indices = @transform_5, window_bounds = array<i64: 64, 1>}, {pipeline_mode = #tpu.pipeline_mode<synchronous>, transform_indices = @transform_6, window_bounds = array<i64: 2, 64>}, {pipeline_mode = #tpu.pipeline_mode<synchronous>, transform_indices = @transform_7, window_bounds = array<i64: 2, 1>}, {transform_indices = @transform_8, window_bounds = array<i64: 2, 128>}]} {
    %c0 = arith.constant 0 : index
    %c0_0 = arith.constant 0 : index
    %0 = vector.load %arg2[%c0, %c0_0] : memref<128x8xbf16, #tpu.memory_space<vmem>>, vector<128x8xbf16>
    %c0_1 = arith.constant 0 : index
    %c0_2 = arith.constant 0 : index
    %1 = vector.load %arg1[%c0_1, %c0_2] : memref<8x128xbf16, #tpu.memory_space<vmem>>, vector<8x128xbf16>
    %cst = arith.constant dense<0.000000e+00> : vector<128x128xf32>
    %2 = tpu.matmul %0, %1, %cst {dimension_numbers = #tpu.dot_dimension_numbers<[1], [0], [0], [1], [0, 0, 1, 1], [], []>} : vector<128x8xbf16>, vector<8x128xbf16>, vector<128x128xf32> -> vector<128x128xf32>
    %3 = arith.truncf %2 : vector<128x128xf32> to vector<128x128xbf16>
    %cst_3 = arith.constant 0.000000e+00 : bf16
    %4 = vector.broadcast %cst_3 : bf16 to vector<128x128xbf16>
    %5 = arith.maximumf %3, %4 : vector<128x128xbf16>
    %c0_4 = arith.constant 0 : index
    %c0_5 = arith.constant 0 : index
    %6 = vector.load %arg3[%c0_4, %c0_5] : memref<128x128xbf16, #tpu.memory_space<vmem>>, vector<128x128xbf16>
    %cst_6 = arith.constant dense<0.000000e+00> : vector<128x128xf32>
    %7 = tpu.matmul %6, %5, %cst_6 {dimension_numbers = #tpu.dot_dimension_numbers<[1], [0], [0], [1], [0, 0, 1, 1], [], []>} : vector<128x128xbf16>, vector<128x128xbf16>, vector<128x128xf32> -> vector<128x128xf32>
    %8 = arith.truncf %7 : vector<128x128xf32> to vector<128x128xbf16>
    %c0_7 = arith.constant 0 : index
    %c0_8 = arith.constant 0 : index
    %9 = vector.load %arg4[%c0_7, %c0_8] : memref<128x1xbf16, #tpu.memory_space<vmem>>, vector<128x1xbf16>
    %10 = vector.broadcast %9 : vector<128x1xbf16> to vector<128x128xbf16>
    %11 = arith.addf %8, %10 : vector<128x128xbf16>
    %cst_9 = arith.constant 0.000000e+00 : bf16
    %12 = vector.broadcast %cst_9 : bf16 to vector<128x128xbf16>
    %13 = arith.maximumf %11, %12 : vector<128x128xbf16>
    %c0_10 = arith.constant 0 : index
    %c0_11 = arith.constant 0 : index
    %14 = vector.load %arg5[%c0_10, %c0_11] : memref<64x128xbf16, #tpu.memory_space<vmem>>, vector<64x128xbf16>
    %cst_12 = arith.constant dense<0.000000e+00> : vector<64x128xf32>
    %15 = tpu.matmul %14, %13, %cst_12 {dimension_numbers = #tpu.dot_dimension_numbers<[1], [0], [0], [1], [0, 0, 1, 1], [], []>} : vector<64x128xbf16>, vector<128x128xbf16>, vector<64x128xf32> -> vector<64x128xf32>
    %16 = arith.truncf %15 : vector<64x128xf32> to vector<64x128xbf16>
    %c0_13 = arith.constant 0 : index
    %c0_14 = arith.constant 0 : index
    %17 = vector.load %arg6[%c0_13, %c0_14] : memref<64x1xbf16, #tpu.memory_space<vmem>>, vector<64x1xbf16>
    %18 = vector.broadcast %17 : vector<64x1xbf16> to vector<64x128xbf16>
    %19 = arith.addf %16, %18 : vector<64x128xbf16>
    %cst_15 = arith.constant 0.000000e+00 : bf16
    %20 = vector.broadcast %cst_15 : bf16 to vector<64x128xbf16>
    %21 = arith.maximumf %19, %20 : vector<64x128xbf16>
    %c0_16 = arith.constant 0 : index
    %c0_17 = arith.constant 0 : index
    %22 = vector.load %arg7[%c0_16, %c0_17] : memref<2x64xbf16, #tpu.memory_space<vmem>>, vector<2x64xbf16>
    %cst_18 = arith.constant dense<0.000000e+00> : vector<2x128xf32>
    %23 = tpu.matmul %22, %21, %cst_18 {dimension_numbers = #tpu.dot_dimension_numbers<[1], [0], [0], [1], [0, 0, 1, 1], [], []>} : vector<2x64xbf16>, vector<64x128xbf16>, vector<2x128xf32> -> vector<2x128xf32>
    %c0_19 = arith.constant 0 : index
    %c0_20 = arith.constant 0 : index
    %24 = vector.load %arg8[%c0_19, %c0_20] : memref<2x1xf32, #tpu.memory_space<vmem>>, vector<2x1xf32>
    %25 = vector.broadcast %24 : vector<2x1xf32> to vector<2x128xf32>
    %26 = arith.addf %23, %25 : vector<2x128xf32>
    %c0_21 = arith.constant 0 : index
    %c0_22 = arith.constant 0 : index
    %27 = vector.load %arg9[%c0_21, %c0_22] : memref<2x128xf32, #tpu.memory_space<vmem>>, vector<2x128xf32>
    tpu.vector_store %arg9[%c0_21, %c0_22], %26 {strides = array<i32>} : memref<2x128xf32, #tpu.memory_space<vmem>>, vector<2x128xf32>,
    return
  }
  func.func @transform_0(%arg0: i32) -> (i32, i32) {
    %c0_i32 = arith.constant 0 : i32
    %c0_i32_0 = arith.constant 0 : i32
    return %c0_i32, %arg0 : i32, i32
  }
  func.func @transform_1(%arg0: i32) -> (i32, i32) {
    %c0_i32 = arith.constant 0 : i32
    %c0_i32_0 = arith.constant 0 : i32
    %c0_i32_1 = arith.constant 0 : i32
    return %c0_i32, %c0_i32_0 : i32, i32
  }
  func.func @transform_2(%arg0: i32) -> (i32, i32) {
    %c0_i32 = arith.constant 0 : i32
    %c0_i32_0 = arith.constant 0 : i32
    %c0_i32_1 = arith.constant 0 : i32
    return %c0_i32, %c0_i32_0 : i32, i32
  }
  func.func @transform_3(%arg0: i32) -> (i32, i32) {
    %c0_i32 = arith.constant 0 : i32
    %c0_i32_0 = arith.constant 0 : i32
    %c0_i32_1 = arith.constant 0 : i32
    return %c0_i32, %c0_i32_0 : i32, i32
  }
  func.func @transform_4(%arg0: i32) -> (i32, i32) {
    %c0_i32 = arith.constant 0 : i32
    %c0_i32_0 = arith.constant 0 : i32
    %c0_i32_1 = arith.constant 0 : i32
    return %c0_i32, %c0_i32_0 : i32, i32
  }
  func.func @transform_5(%arg0: i32) -> (i32, i32) {
    %c0_i32 = arith.constant 0 : i32
    %c0_i32_0 = arith.constant 0 : i32
    %c0_i32_1 = arith.constant 0 : i32
    return %c0_i32, %c0_i32_0 : i32, i32
  }
  func.func @transform_6(%arg0: i32) -> (i32, i32) {
    %c0_i32 = arith.constant 0 : i32
    %c0_i32_0 = arith.constant 0 : i32
    %c0_i32_1 = arith.constant 0 : i32
    return %c0_i32, %c0_i32_0 : i32, i32
  }
  func.func @transform_7(%arg0: i32) -> (i32, i32) {
    %c0_i32 = arith.constant 0 : i32
    %c0_i32_0 = arith.constant 0 : i32
    %c0_i32_1 = arith.constant 0 : i32
    return %c0_i32, %c0_i32_0 : i32, i32
  }
  func.func @transform_8(%arg0: i32) -> (i32, i32) {
    %c0_i32 = arith.constant 0 : i32
    %c0_i32_0 = arith.constant 0 : i32
    return %c0_i32, %arg0 : i32, i32
  }
}

</mosaic_0001>

<bundles_post_ra>
// kernel: tpu_custom_call.1
= control target key start
LH: loop header
LB: loop body
LE: loop exit
PB: predicated region body
PF: predicated region fallthrough
CT: control target
= control target key end

     0   :  { %vm113_vm0 = vcmask 1043456   ;;  %vm88_vm1 = vcmask 64512   ;;  %s1454_s0 = inlined_call_operand.vmem [shape: bf16[8,128], index: 0, kind: input, shape index: {}]   ;;  %s1455_s1 = inlined_call_operand.vmem [shape: bf16[128,8], index: 1, kind: input, shape index: {}]   ;;  %s1456_s2 = inlined_call_operand.vmem [shape: bf16[128,128], index: 2, kind: input, shape index: {}]   ;;  %s1457_s3 = inlined_call_operand.vmem [shape: bf16[128,1], index: 3, kind: input, shape index: {}]   ;;  %s1458_s4 = inlined_call_operand.vmem [shape: bf16[64,128], index: 4, kind: input, shape index: {}]   ;;  %s1459_s5 = inlined_call_operand.vmem [shape: bf16[64,1], index: 5, kind: input, shape index: {}]   ;;  %s1460_s6 = inlined_call_operand.vmem [shape: bf16[2,64], index: 6, kind: input, shape index: {}]   ;;  %s1461_s7 = inlined_call_operand.vmem [shape: f32[2,1], index: 7, kind: input, shape index: {}]   ;;  %s1462_s8 = inlined_call_operand.hbm [shape: f32[2,128], index: 8, kind: output, shape index: {}]  }
   0x1   :  { %v47_v0 = vld [vmem:[%s1454_s0] sm:$0xf]  ;;  %v1152_v3 = vld [vmem:[%s1455_s1 + $0x8] sm:$0xff]   ;;  %v1153_v4 = vld [vmem:[%s1455_s1 + $0x10] sm:$0xff]  }
   0x2   :  { %v1151_v1 = vld [vmem:[%s1455_s1] sm:$0xff]   ;;  %1143 = vmatprep.subr.msk.bf16.mxu0 %vm113_vm0, %v47_v0  ;;  %v115_v2 = vsel %vm113_vm0, %v47_v0, 0  ;;  %v1154_v5 = vld [vmem:[%s1455_s1 + $0x18] sm:$0xff]  }
   0x3   :  { %1058 = vmatpush3.bf16.msra.mxu0 %v115_v2  ;;  %1059 = vmatprep.mubr.msk.bf16.mxu0 %vm88_vm1, %v1151_v1  ;;  %v1155_v6 = vld [vmem:[%s1455_s1 + $0x20] sm:$0xff]  }
   0x6   :  { %1060 = vmatmul.mubr.msk.bf16.vlgmr.msra.gmra.mrb[0].mxu0 %vm88_vm1, %v1152_v3 }
   0x7   :  { %1063 = vmatprep.mubr.msk.bf16.mxu0 %vm88_vm1, %v1153_v4 }
   0xe   :  { %1064 = vmatmul.mubr.msk.bf16.gmra.mrb[4].mxu0 %vm88_vm1, %v1154_v5 }
   0xf   :  { %1067 = vmatprep.mubr.msk.bf16.mxu0 %vm88_vm1, %v1155_v6 }
  0x10   :  { %13 = vsyncpa [#allocation3], 0  ;;  %v1156_v7 = vld [vmem:[%s1455_s1 + $0x28] sm:$0xff]   ;;  %v1157_v8 = vld [vmem:[%s1455_s1 + $0x30] sm:$0xff]   ;;  %v1195_v10 = vmov 0   ;;  %vm1198_vm2 = vmmov 0  }
  0x11   :  { %v1158_v9 = vld [vmem:[%s1455_s1 + $0x38] sm:$0xff]   ;;  %1149 = vset.pattern.permute.xlu0 %v1195_v10  ;;  %1150 = vset.pattern.permute.xlu1 %v1195_v10  ;;  %v1159_v11 = vld [vmem:[%s1456_s2] sm:$0xff]   ;;  %v401_v13 = vld [vmem:[%s1457_s3 + $0x8] sm:$0xf]  ;;  %vm915_vm3 = vcmask 523264   ;;  %s1199_s20 = smov [#allocation2]  }
  0x12   :  { %1091 = vmatprep.mubr.bf16.mxu1 %v1159_v11  ;;  %v399_v12 = vld [vmem:[%s1457_s3] sm:$0xf]  ;;  %441 = vperm.xlu1 %1150, %v401_v13   ;;  %v400_v14 = vld [vmem:[%s1457_s3 + $0x4] sm:$0xf]  ;;  %v402_v15 = vld [vmem:[%s1457_s3 + $0xc] sm:$0xf] }
  0x13   :  { %417 = vperm.xlu0 %1149, %v399_v12   ;;  %v403_v16 = vld [vmem:[%s1457_s3 + $0x10] sm:$0xf]  ;;  %v404_v17 = vld [vmem:[%s1457_s3 + $0x14] sm:$0xf]  ;;  %v405_v18 = vld [vmem:[%s1457_s3 + $0x18] sm:$0xf] }
  0x14   :  { %v406_v19 = vld [vmem:[%s1457_s3 + $0x1c] sm:$0xf]  ;;  %v407_v20 = vld [vmem:[%s1457_s3 + $0x20] sm:$0xf]  ;;  %v408_v21 = vld [vmem:[%s1457_s3 + $0x24] sm:$0xf] }
  0x15   :  { %v409_v22 = vld [vmem:[%s1457_s3 + $0x28] sm:$0xf]  ;;  %v410_v23 = vld [vmem:[%s1457_s3 + $0x2c] sm:$0xf]  ;;  %v411_v24 = vld [vmem:[%s1457_s3 + $0x30] sm:$0xf] }
  0x16   :  { %1068 = vmatmul.mubr.msk.bf16.gmra.mrb[8].mxu0 %vm88_vm1, %v1156_v7  ;;  %453 = vperm.xlu1 %1150, %v402_v15   ;;  %v412_v25 = vld [vmem:[%s1457_s3 + $0x34] sm:$0xf]  ;;  %v413_v26 = vld [vmem:[%s1457_s3 + $0x38] sm:$0xf]  ;;  %v414_v27 = vld [vmem:[%s1457_s3 + $0x3c] sm:$0xf] }
  0x17   :  { %1071 = vmatprep.mubr.msk.bf16.mxu0 %vm88_vm1, %v1157_v8  ;;  %429 = vperm.xlu0 %1149, %v400_v14   ;;  %v772_v28 = vld [vmem:[%s1459_s5] sm:$0xf]  ;;  %v773_v29 = vld [vmem:[%s1459_s5 + $0x4] sm:$0xf]  ;;  %v774_v30 = vld [vmem:[%s1459_s5 + $0x8] sm:$0xf] }
  0x18   :  { %v775_v31 = vld [vmem:[%s1459_s5 + $0xc] sm:$0xf]  ;;  %v776_v32 = vld [vmem:[%s1459_s5 + $0x10] sm:$0xf]  ;;  %v777_v33 = vld [vmem:[%s1459_s5 + $0x14] sm:$0xf] }
  0x19   :  { %v778_v34 = vld [vmem:[%s1459_s5 + $0x18] sm:$0xf]  ;;  %v779_v35 = vld [vmem:[%s1459_s5 + $0x1c] sm:$0xf]  ;;  %v909_v36 = vld [vmem:[%s1461_s7] sm:$0x3] }
  0x1a   :  { %477 = vperm.xlu1 %1150, %v404_v17   ;;  %v1160_v5 = vld [vmem:[%s1456_s2 + $0x8] sm:$0xff]   ;;  %v1161_v6 = vld [vmem:[%s1456_s2 + $0x10] sm:$0xff]   ;;  %v1162_v7 = vld [vmem:[%s1456_s2 + $0x18] sm:$0xff]   ;;  %s966_s21 = sshll.u32 %s1199_s20, 4  ;;  %s967_s21 = int_to_ptr.vmem [resolvable:$true] %s966_s21 }
  0x1b   :  { %465 = vperm.xlu0 %1149, %v403_v16   ;;  %v1163_v8 = vld [vmem:[%s1456_s2 + $0x20] sm:$0xff]   ;;  %v1165_v11 = vld [vmem:[%s1456_s2 + $0x30] sm:$0xff]   ;;  %v1166_v12 = vld [vmem:[%s1456_s2 + $0x38] sm:$0xff]   ;;  %s1171_s22 = scalar_lea.vmem %s967_s21, 32  ;;  %p1176_p1 = scmp.lt.s32.totalorder %s967_s21, %s967_s21 }
  0x1c   :  { %v1167_v13 = vld [vmem:[%s1458_s4] sm:$0xff]   ;;  %p1172_p0 = scmp.ne.s32.totalorder %s967_s21, %s1171_s22  ;;  %p1177_p2 = scmp.lt.s32.totalorder %s1171_s22, %s1171_s22 }
  0x1e   :  { %1072 = vmatmul.mubr.msk.bf16.gmra.mrb[12].mxu0 %vm88_vm1, %v1158_v9  ;;  %501 = vperm.xlu1 %1150, %v406_v19   ;;  %v1164_v9 = vld [vmem:[%s1456_s2 + $0x28] sm:$0xff]   ;;  %p1178_p3 = por %p1177_p2, %p1176_p1 }
  0x1f   :  { %489 = vperm.xlu0 %1149, %v405_v18   ;;  %1123 = vmatprep.mubr.bf16.mxu0 %v1167_v13  ;;  %v1196_v18 = vmov 839922192  }
  0x20   :  { %v421_v19 = vunpack.c.l.s4 %v1196_v18  ;;  %p1179_p4 = pnand %p1178_p3, %p1172_p0 }
  0x22   :  { %525 = vperm.xlu1 %1150, %v408_v21   ;;  %v422_v21 = vunpack.c.0.s8 %v421_v19 }
  0x23   :  { %513 = vperm.xlu0 %1149, %v407_v20   ;;  %v423_v20 = vlaneseq }
  0x26   :  { %549 = vperm.xlu1 %1150, %v410_v23  }
  0x27   :  { %537 = vperm.xlu0 %1149, %v409_v22   ;;  %v424_v22 = vshrl.u32 %v423_v20, 7 }
  0x2a   :  { %573 = vperm.xlu1 %1150, %v412_v25   ;;  %v1392_v25 = vsub.s32 %v422_v21, %v424_v22 }
  0x2b   :  { %561 = vperm.xlu0 %1149, %v411_v24  }
  0x2e   :  { %597 = vperm.xlu1 %1150, %v414_v27  }
  0x2f   :  { %585 = vperm.xlu0 %1149, %v413_v26  }
  0x32   :  { %794 = vperm.xlu1 %1150, %v773_v29  }
  0x33   :  { %782 = vperm.xlu0 %1149, %v772_v28  }
  0x36   :  { %818 = vperm.xlu1 %1150, %v775_v31  }
  0x37   :  { %806 = vperm.xlu0 %1149, %v774_v30  }
  0x3a   :  { %842 = vperm.xlu1 %1150, %v777_v33  }
  0x3b   :  { %830 = vperm.xlu0 %1149, %v776_v32  }
  0x3e   :  { %866 = vperm.xlu1 %1150, %v779_v35  }
  0x3f   :  { %854 = vperm.xlu0 %1149, %v778_v34  }
  0x43   :  { %912 = vperm.xlu0 %1149, %v909_v36  }
  0x91   :  { %v442_v15 = vpop.permute.xlu1 %441 }
  0x92   :  { %v418_v14 = vpop.permute.xlu0 %417  ;;  %v450_v26 = vrot.slane %v442_v15, %v1392_v25 }
  0x93   :  { %v426_v30 = vrot.slane %v418_v14, %v1392_v25 }
  0x95   :  { %v454_v17 = vpop.permute.xlu1 %453 }
  0x96   :  { %v430_v16 = vpop.permute.xlu0 %429  ;;  %v462_v27 = vrot.slane %v454_v17, %v1392_v25 }
  0x97   :  { %v438_v31 = vrot.slane %v430_v16, %v1392_v25 }
  0x98   :  { %v999_v34 = vcombine.low %v450_v26, %v462_v27 }
  0x99   :  { %v478_v24 = vpop.permute.xlu1 %477 }
  0x9a   :  { %v466_v23 = vpop.permute.xlu0 %465 }
  0x9d   :  { %v502_v29 = vpop.permute.xlu1 %501 }
  0x9e   :  { %v490_v28 = vpop.permute.xlu0 %489 }
  0xd9   :  { %v1061_v37 = vpop.f32.mrb[0].mxu0 }
  0xda   :  { %v151_v38 = vpop.f32.mrb[1].mxu0 }
  0xdb   :  { %v1062_v39 = vpop.f32.mrb[2].mxu0 }
  0xdc   :  { %v215_v40 = vpack.c.bf16 %v1062_v39, %v1061_v37  ;;  %v154_v41 = vpop.f32.mrb[3].mxu0  ;;  %v514_v39 = vpop.permute.xlu0 %513 }
  0xdd   :  { %v214_v42 = vpack.c.bf16 %v154_v41, %v151_v38  ;;  %v998_v38 = vcombine.low %v426_v30, %v438_v31  ;;  %v526_v41 = vpop.permute.xlu1 %525 }
  0xde   :  { %v223_v44 = vmax.bf16 %v1195_v10, %v215_v40 }
  0xdf   :  { %v222_v43 = vmax.bf16 %v1195_v10, %v214_v42 }
  0xe1   :  { %v1065_v45 = vpop.f32.mrb[4].mxu0  ;;  %1075 = vmatprep.subr.bf16.mxu1 %v222_v43 }
  0xe2   :  { %v167_v46 = vpop.f32.mrb[5].mxu0  ;;  %1076 = vmatpush3.bf16.msra.mxu1 %v222_v43 }
  0xe3   :  { %v1066_v47 = vpop.f32.mrb[6].mxu0  ;;  %1077 = vmatprep.subr.bf16.mxu1 %v223_v44 }
  0xe4   :  { %v217_v48 = vpack.c.bf16 %v1066_v47, %v1065_v45  ;;  %v170_v49 = vpop.f32.mrb[7].mxu0  ;;  %v486_v45 = vrot.slane %v478_v24, %v1392_v25  ;;  %v510_v47 = vrot.slane %v502_v29, %v1392_v25 }
  0xe5   :  { %v216_v50 = vpack.c.bf16 %v170_v49, %v167_v46  ;;  %v498_v46 = vrot.slane %v490_v28, %v1392_v25 }
  0xe6   :  { %1078 = vmatpush3.bf16.msra.mxu1 %v223_v44  ;;  %v225_v52 = vmax.bf16 %v1195_v10, %v217_v48  ;;  %v474_v44 = vrot.slane %v466_v23, %v1392_v25 }
  0xe7   :  { %v224_v51 = vmax.bf16 %v1195_v10, %v216_v50 }
  0xe9   :  { %v1069_v53 = vpop.f32.mrb[8].mxu0  ;;  %1079 = vmatprep.subr.bf16.mxu1 %v224_v51 }
  0xea   :  { %v183_v54 = vpop.f32.mrb[9].mxu0  ;;  %1080 = vmatpush3.bf16.msra.mxu1 %v224_v51  ;;  %v538_v51 = vpop.permute.xlu0 %537 }
  0xeb   :  { %v1070_v55 = vpop.f32.mrb[10].mxu0  ;;  %1081 = vmatprep.subr.bf16.mxu1 %v225_v52 }
  0xec   :  { %v219_v56 = vpack.c.bf16 %v1070_v55, %v1069_v53  ;;  %v186_v57 = vpop.f32.mrb[11].mxu0 }
  0xed   :  { %v218_v58 = vpack.c.bf16 %v186_v57, %v183_v54  ;;  %v550_v54 = vpop.permute.xlu1 %549  ;;  %v1000_v57 = vcombine.low %v474_v44, %v486_v45 }
  0xee   :  { %1082 = vmatpush3.bf16.msra.mxu1 %v225_v52  ;;  %v227_v60 = vmax.bf16 %v1195_v10, %v219_v56 }
  0xef   :  { %v226_v59 = vmax.bf16 %v1195_v10, %v218_v58  ;;  %v1001_v58 = vcombine.low %v498_v46, %v510_v47 }
  0xf1   :  { %v1073_v61 = vpop.f32.mrb[12].mxu0  ;;  %1083 = vmatprep.subr.bf16.mxu1 %v226_v59 }
  0xf2   :  { %v199_v62 = vpop.f32.mrb[13].mxu0  ;;  %1084 = vmatpush3.bf16.msra.mxu1 %v226_v59 }
  0xf3   :  { %v1074_v63 = vpop.f32.mrb[14].mxu0  ;;  %1085 = vmatprep.subr.bf16.mxu1 %v227_v60 }
  0xf4   :  { %v221_v0 = vpack.c.bf16 %v1074_v63, %v1073_v61  ;;  %v202_v1 = vpop.f32.mrb[15].mxu0  ;;  %v534_v63 = vrot.slane %v526_v41, %v1392_v25  ;;  %v1197_v41 = vmov 0.0  }
  0xf5   :  { %v220_v2 = vpack.c.bf16 %v202_v1, %v199_v62  ;;  %v522_v62 = vrot.slane %v514_v39, %v1392_v25  ;;  %v558_v1 = vrot.slane %v550_v54, %v1392_v25  ;;  %v1169_v39 = vld [vmem:[%s1458_s4 + $0x10] sm:$0xff]  }
  0xf6   :  { %1086 = vmatpush3.bf16.msra.mxu1 %v227_v60  ;;  %v229_v4 = vmax.bf16 %v1195_v10, %v221_v0  ;;  %v546_v0 = vrot.slane %v538_v51, %v1392_v25 }
  0xf7   :  { %v228_v3 = vmax.bf16 %v1195_v10, %v220_v2  ;;  %v562_v2 = vpop.permute.xlu0 %561 }
  0xf8   :  { %v1003_v13 = vcombine.low %v546_v0, %v558_v1  ;;  %v570_v17 = vrot.slane %v562_v2, %v1392_v25 }
  0xf9   :  { %1087 = vmatprep.subr.bf16.mxu1 %v228_v3 }
  0xfa   :  { %1088 = vmatpush3.bf16.msra.mxu1 %v228_v3 }
  0xfb   :  { %1089 = vmatprep.subr.bf16.mxu1 %v229_v4  ;;  %v586_v18 = vpop.permute.xlu0 %585 }
  0xfc   :  { %v594_v21 = vrot.slane %v586_v18, %v1392_v25  ;;  %v908_v18 = vld [vmem:[%s1460_s6] sm:$0x1] }
  0xfe   :  { %1090 = vmatpush3.bf16.msra.mxu1 %v229_v4 }
 0x101   :  { %1092 = vmatmul.mubr.bf16.vlgmr.msra.gmra.mrb[0].mxu1 %v1160_v5  ;;  %v574_v5 = vpop.permute.xlu1 %573 }
 0x102   :  { %1095 = vmatprep.mubr.bf16.mxu1 %v1161_v6  ;;  %v582_v20 = vrot.slane %v574_v5, %v1392_v25 }
 0x104   :  { %v1004_v31 = vcombine.low %v570_v17, %v582_v20 }
 0x105   :  { %v598_v19 = vpop.permute.xlu1 %597 }
 0x106   :  { %v606_v22 = vrot.slane %v598_v19, %v1392_v25 }
 0x109   :  { %1096 = vmatmul.mubr.bf16.gmra.mrb[4].mxu1 %v1162_v7 }
 0x10a   :  { %1099 = vmatprep.mubr.bf16.mxu1 %v1163_v8 }
 0x111   :  { %1100 = vmatmul.mubr.bf16.gmra.mrb[8].mxu1 %v1164_v9 }
 0x112   :  { %1103 = vmatprep.mubr.bf16.mxu1 %v1165_v11 }
 0x119   :  { %1104 = vmatmul.mubr.bf16.gmra.mrb[12].mxu1 %v1166_v12  ;;  %v1002_v12 = vcombine.low %v522_v62, %v534_v63 }
 0x1d4   :  { %v1093_v32 = vpop.f32.mrb[0].mxu1 }
 0x1d5   :  { %v328_v33 = vpop.f32.mrb[1].mxu1 }
 0x1d6   :  { %v1094_v35 = vpop.f32.mrb[2].mxu1 }
 0x1d7   :  { %v392_v36 = vpack.c.bf16 %v1094_v35, %v1093_v32  ;;  %v331_v37 = vpop.f32.mrb[3].mxu1  ;;  %v1005_v32 = vcombine.low %v594_v21, %v606_v22 }
 0x1d8   :  { %v391_v40 = vpack.c.bf16 %v331_v37, %v328_v33 }
 0x1d9   :  { %v656_v42 = vadd.bf16 %v999_v34, %v392_v36 }
 0x1da   :  { %v655_v43 = vadd.bf16 %v998_v38, %v391_v40  ;;  %v1168_v38 = vld [vmem:[%s1458_s4 + $0x8] sm:$0xff]   ;;  %v1170_v40 = vld [vmem:[%s1458_s4 + $0x18] sm:$0xff]  }
 0x1db   :  { %v664_v53 = vmax.bf16 %v1195_v10, %v656_v42  ;;  %v795_v42 = vpop.permute.xlu1 %794 }
 0x1dc   :  { %v1097_v48 = vpop.f32.mrb[4].mxu1  ;;  %v663_v49 = vmax.bf16 %v1195_v10, %v655_v43  ;;  %v783_v43 = vpop.permute.xlu0 %782 }
 0x1dd   :  { %v344_v50 = vpop.f32.mrb[5].mxu1 }
 0x1de   :  { %v1098_v52 = vpop.f32.mrb[6].mxu1  ;;  %1107 = vmatprep.subr.bf16.mxu0 %v663_v49 }
 0x1df   :  { %v394_v55 = vpack.c.bf16 %v1098_v52, %v1097_v48  ;;  %v347_v56 = vpop.f32.mrb[7].mxu1  ;;  %1108 = vmatpush3.bf16.msra.mxu0 %v663_v49  ;;  %v819_v44 = vpop.permute.xlu1 %818  ;;  %v791_v49 = vrot.slane %v783_v43, %v1392_v25 }
 0x1e0   :  { %v393_v59 = vpack.c.bf16 %v347_v56, %v344_v50  ;;  %1109 = vmatprep.subr.bf16.mxu0 %v664_v53  ;;  %v807_v45 = vpop.permute.xlu0 %806  ;;  %v827_v48 = vrot.slane %v819_v44, %v1392_v25  ;;  %v803_v50 = vrot.slane %v795_v42, %v1392_v25 }
 0x1e1   :  { %v658_v60 = vadd.bf16 %v1001_v58, %v394_v55  ;;  %v815_v47 = vrot.slane %v807_v45, %v1392_v25 }
 0x1e2   :  { %v657_v61 = vadd.bf16 %v1000_v57, %v393_v59  ;;  %v1010_v58 = vcombine.low %v791_v49, %v803_v50 }
 0x1e3   :  { %1110 = vmatpush3.bf16.msra.mxu0 %v664_v53  ;;  %v666_v8 = vmax.bf16 %v1195_v10, %v658_v60  ;;  %v843_v46 = vpop.permute.xlu1 %842  ;;  %v1011_v55 = vcombine.low %v815_v47, %v827_v48 }
 0x1e4   :  { %v1101_v3 = vpop.f32.mrb[8].mxu1  ;;  %v665_v4 = vmax.bf16 %v1195_v10, %v657_v61  ;;  %v831_v51 = vpop.permute.xlu0 %830 }
 0x1e5   :  { %v360_v6 = vpop.f32.mrb[9].mxu1  ;;  %v839_v2 = vrot.slane %v831_v51, %v1392_v25 }
 0x1e6   :  { %v1102_v7 = vpop.f32.mrb[10].mxu1  ;;  %1111 = vmatprep.subr.bf16.mxu0 %v665_v4 }
 0x1e7   :  { %v396_v9 = vpack.c.bf16 %v1102_v7, %v1101_v3  ;;  %v363_v11 = vpop.f32.mrb[11].mxu1  ;;  %1112 = vmatpush3.bf16.msra.mxu0 %v665_v4  ;;  %v867_v59 = vpop.permute.xlu1 %866  ;;  %v851_v3 = vrot.slane %v843_v46, %v1392_v25 }
 0x1e8   :  { %v395_v14 = vpack.c.bf16 %v363_v11, %v360_v6  ;;  %1113 = vmatprep.subr.bf16.mxu0 %v666_v8  ;;  %v855_v62 = vpop.permute.xlu0 %854  ;;  %v875_v1 = vrot.slane %v867_v59, %v1392_v25 }
 0x1e9   :  { %v660_v15 = vadd.bf16 %v1003_v13, %v396_v9  ;;  %v863_v0 = vrot.slane %v855_v62, %v1392_v25 }
 0x1ea   :  { %v659_v16 = vadd.bf16 %v1002_v12, %v395_v14  ;;  %v1012_v12 = vcombine.low %v839_v2, %v851_v3 }
 0x1eb   :  { %1114 = vmatpush3.bf16.msra.mxu0 %v666_v8  ;;  %v668_v28 = vmax.bf16 %v1195_v10, %v660_v15  ;;  %v1013_v8 = vcombine.low %v863_v0, %v875_v1 }
 0x1ec   :  { %v1105_v23 = vpop.f32.mrb[12].mxu1  ;;  %v667_v24 = vmax.bf16 %v1195_v10, %v659_v16  ;;  %v913_v19 = vpop.permute.xlu0 %912 }
 0x1ed   :  { %v376_v26 = vpop.f32.mrb[13].mxu1 }
 0x1ee   :  { %v1106_v27 = vpop.f32.mrb[14].mxu1  ;;  %1115 = vmatprep.subr.bf16.mxu0 %v667_v24 }
 0x1ef   :  { %v398_v29 = vpack.c.bf16 %v1106_v27, %v1105_v23  ;;  %v379_v30 = vpop.f32.mrb[15].mxu1  ;;  %1116 = vmatpush3.bf16.msra.mxu0 %v667_v24 }
 0x1f0   :  { %v397_v33 = vpack.c.bf16 %v379_v30, %v376_v26  ;;  %1117 = vmatprep.subr.bf16.mxu0 %v668_v28 }
 0x1f1   :  { %v662_v34 = vadd.bf16 %v1005_v32, %v398_v29 }
 0x1f2   :  { %v661_v35 = vadd.bf16 %v1004_v31, %v397_v33 }
 0x1f3   :  { %1118 = vmatpush3.bf16.msra.mxu0 %v668_v28  ;;  %v670_v37 = vmax.bf16 %v1195_v10, %v662_v34 }
 0x1f4   :  { %v669_v36 = vmax.bf16 %v1195_v10, %v661_v35 }
 0x1f6   :  { %1119 = vmatprep.subr.bf16.mxu0 %v669_v36 }
 0x1f7   :  { %1120 = vmatpush3.bf16.msra.mxu0 %v669_v36 }
 0x1f8   :  { %1121 = vmatprep.subr.bf16.mxu0 %v670_v37 }
 0x1fb   :  { %1122 = vmatpush3.bf16.msra.mxu0 %v670_v37 }
 0x1fc   :  { %1131 = vmatprep.subr.bf16.mxu0 %v1197_v41 }
 0x1fe   :  { %1124 = vmatmul.mubr.bf16.vlgmr.msra.gmra.mrb[16].mxu0 %v1168_v38 }
 0x1ff   :  { %1127 = vmatprep.mubr.bf16.mxu0 %v1169_v39 }
 0x206   :  { %1128 = vmatmul.mubr.bf16.gmra.mrb[20].mxu0 %v1170_v40 }
 0x207   :  { %1139 = vmatprep.mubr.msk.bf16.mxu0 %vm1198_vm2, %v1197_v41 }
 0x2d1   :  { %v1125_v52 = vpop.f32.mrb[16].mxu0 }
 0x2d2   :  { %v737_v53 = vpop.f32.mrb[17].mxu0 }
 0x2d3   :  { %v1126_v54 = vpop.f32.mrb[18].mxu0 }
 0x2d4   :  { %v769_v56 = vpack.c.bf16 %v1126_v54, %v1125_v52  ;;  %v740_v57 = vpop.f32.mrb[19].mxu0 }
 0x2d5   :  { %v768_v60 = vpack.c.bf16 %v740_v57, %v737_v53 }
 0x2d6   :  { %v901_v61 = vadd.bf16 %v1011_v55, %v769_v56 }
 0x2d7   :  { %v900_v63 = vadd.bf16 %v1010_v58, %v768_v60 }
 0x2d8   :  { %v905_v13 = vmax.bf16 %v1195_v10, %v901_v61 }
 0x2d9   :  { %v904_v4 = vmax.bf16 %v1195_v10, %v900_v63  ;;  %v1129_v5 = vpop.f32.mrb[20].mxu0 }
 0x2da   :  { %v753_v6 = vpop.f32.mrb[21].mxu0 }
 0x2db   :  { %v1130_v7 = vpop.f32.mrb[22].mxu0  ;;  %1132 = vmatpush3.bf16.msra.mxu0 %v904_v4 }
 0x2dc   :  { %v771_v9 = vpack.c.bf16 %v1130_v7, %v1129_v5  ;;  %v756_v11 = vpop.f32.mrb[23].mxu0  ;;  %1133 = vmatprep.subr.bf16.mxu0 %v1197_v41 }
 0x2dd   :  { %v770_v14 = vpack.c.bf16 %v756_v11, %v753_v6 }
 0x2de   :  { %v903_v15 = vadd.bf16 %v1013_v8, %v771_v9 }
 0x2df   :  { %v902_v16 = vadd.bf16 %v1012_v12, %v770_v14  ;;  %1134 = vmatpush3.bf16.msra.mxu0 %v905_v13 }
 0x2e0   :  { %1135 = vmatprep.subr.bf16.mxu0 %v1197_v41  ;;  %v907_v17 = vmax.bf16 %v1195_v10, %v903_v15 }
 0x2e1   :  { %v906_v25 = vmax.bf16 %v1195_v10, %v902_v16 }
 0x2e3   :  { %1136 = vmatpush3.bf16.msra.mxu0 %v906_v25 }
 0x2e4   :  { %1137 = vmatprep.subr.bf16.mxu0 %v1197_v41 }
 0x2e7   :  { %1138 = vmatpush3.bf16.msra.mxu0 %v907_v17 }
 0x2ea   :  { %1140 = vmatmul.mubr.msk.bf16.vlgmr.msra.gmra.mrb[24].mxu0 %vm915_vm3, %v908_v18 }
 0x3bd   :  { %v953_v20 = vpop.f32.mrb[24].mxu0 }
 0x3be   :  { %v954_v21 = vadd.f32 %v953_v20, %v913_v19  ;;  %v1141_v22 = vpop.f32.mrb[25].mxu0 }
 0x3bf   :  { %v956_v23 = vpop.f32.mrb[26].mxu0 }
 0x3c0   :  { %959 = vst [vmem:[#allocation2] sm:$0x3] %v954_v21  ;;  %v1142_v24 = vpop.f32.mrb[27].mxu0 }
 0x3c1   :  { %1182 = shalt.err (!%p1179_p4)
}
 0x3c2   :  { %s1183_s24 = scalar_lea.hbm %s1462_s8, 32 }
 0x3c3   :  { %p1184_p5 = scmp.ne.s32.totalorder %s1462_s8, %s1183_s24  ;;  %p1187_p6 = scmp.lt.u32.totalorder %s1183_s24, %s1462_s8 }
 0x3c5   :  { %p1189_p7 = pnand %p1187_p6, %p1184_p5 }
 0x3c7   :  { %1192 = shalt.err (!%p1189_p7)
}
 0x3c8   :  { %969 = dma.vmem_to_hbm [thread:$0]  %s967_s21, 32, %s1462_s8, [#allocation3]  }
 0x3c9   :  { %1193 = dma.done.wait [#allocation3], 32  }
 0x3ca   :  { %1194 = vsyncadd [#allocation3], 4294967264 }
 0x3cb   :  { %973 = vsyncpa [#allocation3], 1 }

</bundles_post_ra>
